<compile_context>
chip_gen: v6e
topology: v6e:2x2x1
jax: 0.10.0
libtpu: 0.0.40
codegen_flags: <defaults>
</compile_context>

<pallas_src>
import jax
import jax.numpy as jnp
from jax.experimental import pallas as pl
from jax.experimental.pallas import tpu as pltpu


LANE = 128
SUBLANE_BF16 = 16                         # bf16 packs 16 rows per sublane group
VMEM_BUDGET_BYTES = 36 * 1024 * 1024      # operand budget (safe on v7x 64 MiB/TC)
VMEM_LIMIT_BYTES = 40 * 1024 * 1024       # scoped-VMEM limit handed to Mosaic


def _round_up(n, m):
    return ((n + m - 1) // m) * m


# ----------------------------------------------------------------------------
# Kernels
# ----------------------------------------------------------------------------
def _resident_kernel(x_ref, w_ref, b_ref, pcaw_ref, out_ref):
    """W fully VMEM-resident: one batch tile per grid step, no k axis."""
    # model(x, early_return=True): dense + bias + tanh, f32 accumulation.
    feat = jnp.tanh(
        jnp.dot(x_ref[...], w_ref[...], preferred_element_type=jnp.float32)
        + b_ref[...]
    )
    # sum(pca_weights[None,:,:] * feat[:,:,None], dim=1) == feat @ pca_weights.
    # Done in f32 (tiny matmul) for accuracy; store in out_ref's (bf16) dtype.
    out_ref[...] = jnp.dot(
        feat, pcaw_ref[...], preferred_element_type=jnp.float32
    ).astype(out_ref.dtype)


def _streaming_kernel(x_ref, w_ref, b_ref, pcaw_ref, out_ref, acc_ref):
    """Fallback when W does not fit VMEM: stream the contraction axis."""
    k = pl.program_id(1)

    @pl.when(k == 0)
    def _init():
        acc_ref[...] = jnp.zeros_like(acc_ref)

    acc_ref[...] += jnp.dot(
        x_ref[...], w_ref[...], preferred_element_type=jnp.float32
    )

    @pl.when(k == pl.num_programs(1) - 1)
    def _finalize():
        feat = jnp.tanh(acc_ref[...] + b_ref[...])
        out_ref[...] = jnp.dot(
            feat, pcaw_ref[...], preferred_element_type=jnp.float32
        ).astype(out_ref.dtype)


# ----------------------------------------------------------------------------
# Init-time buffer prep (mirrors register_buffer('pca_weights', pca.T))
# ----------------------------------------------------------------------------
def prepare_pca_weights(pca):
    """Transpose + zero-pad both dims to 128-lane multiples, ONCE at init.
    Kept f32: it is small and VMEM-resident, and an f32 second matmul is
    effectively free while tightening accuracy."""
    num_k, feat = pca.shape
    kp = _round_up(num_k, LANE)
    fp = _round_up(feat, LANE)
    pcw = jnp.transpose(pca, (1, 0)).astype(jnp.float32)      # [F, K]
    pcw = jnp.pad(pcw, ((0, fp - feat), (0, kp - num_k)))     # [Fp, Kp]
    return pcw, num_k


# ----------------------------------------------------------------------------
# Tile selection / VMEM accounting
# ----------------------------------------------------------------------------
def _choose_batch_tile(batch, tb_request):
    b_min = _round_up(batch, SUBLANE_BF16)
    tb = max(SUBLANE_BF16, min(_round_up(tb_request, SUBLANE_BF16), b_min))
    # Guarantee >= 2 batch tiles whenever batch admits two: the batch axis is
    # the only megacore-shardable axis, so a single tile would leave one of
    # v7x's 2 TensorCores idle.
    if b_min >= 2 * SUBLANE_BF16 and b_min // tb < 2:
        tb = _round_up(b_min // 2, SUBLANE_BF16)
    return tb


def _resident_vmem_bytes(tb, d_pad, f_pad, kp, out_itemsize):
    return (2 * tb * d_pad * 2          # x tile, bf16, double-buffered
            + 2 * d_pad * f_pad * 2     # W, bf16 (counted double-buffered)
            + 2 * f_pad * 4             # bias, f32
            + 2 * f_pad * kp * 4        # pca^T, f32
            + 2 * tb * kp * out_itemsize)


def _streaming_vmem_bytes(tb, td, f_pad, kp, out_itemsize):
    return (2 * tb * td * 2
            + 2 * td * f_pad * 2
            + 2 * f_pad * 4
            + 2 * f_pad * kp * 4
            + 2 * tb * kp * out_itemsize
            + tb * f_pad * 4)           # f32 accumulator scratch


# ----------------------------------------------------------------------------
# Forward wrapper (ModelCombinerPCA.forward)
# ----------------------------------------------------------------------------
def model_combiner_pca(x_dict, w, b, pca_weights_padded, num_k, *,
                       tb=256, td=512, out_dtype=jnp.bfloat16):
    """x_dict: dict[str, [B, d_i]] f32; w,b: model params ([D_in,F],[1,F]) f32;
    pca_weights_padded: [Fp, Kp] f32 from prepare_pca_weights; num_k: true K."""
    # pre_eval_func: dict -> tensor (deterministic key order) -- plain-JAX glue.
    # TODO(synk): fuse the concat + bf16 cast into the pallas_call input
    # pipeline (allow_input_fusion / per-entry operands with column-offset
    # index_maps) to kill the extra HBM pass over x.
    x = jnp.concatenate([x_dict[key] for key in sorted(x_dict.keys())], axis=-1)

    batch, d_in = x.shape
    feat_dim = w.shape[1]
    f_pad, kp = pca_weights_padded.shape
    assert f_pad >= feat_dim
    out_itemsize = jnp.dtype(out_dtype).itemsize

    tb = _choose_batch_tile(batch, tb)
    d_pad_full = _round_up(d_in, LANE)

    b_f32 = jnp.pad(b.astype(jnp.float32), ((0, 0), (0, f_pad - feat_dim)))

    # ---- path selection: resident W whenever it fits the VMEM budget -------
    use_resident = False
    tb_res = tb
    while True:
        if _resident_vmem_bytes(tb_res, d_pad_full, f_pad, kp,
                                out_itemsize) <= VMEM_BUDGET_BYTES:
            use_resident = True
            break
        if tb_res <= SUBLANE_BF16:
            break
        tb_res = max(SUBLANE_BF16, _round_up(tb_res // 2, SUBLANE_BF16))

    if use_resident:
        tb = tb_res
        b_pad = _round_up(batch, tb)
        d_pad = d_pad_full
        x_p = jnp.pad(x, ((0, b_pad - batch),
                          (0, d_pad - d_in))).astype(jnp.bfloat16)
        w_p = jnp.pad(w, ((0, d_pad - d_in),
                          (0, f_pad - feat_dim))).astype(jnp.bfloat16)

        grid = (b_pad // tb,)
        cost = pl.CostEstimate(
            flops=2 * b_pad * d_pad * f_pad + 2 * b_pad * f_pad * kp,
            transcendentals=b_pad * f_pad,
            bytes_accessed=(x_p.size * 2 + w_p.size * 2 + b_f32.size * 4
                            + pca_weights_padded.size * 4
                            + b_pad * kp * out_itemsize),
        )
        out = pl.pallas_call(
            _resident_kernel,
            out_shape=jax.ShapeDtypeStruct((b_pad, kp), out_dtype),
            grid_spec=pltpu.PrefetchScalarGridSpec(
                num_scalar_prefetch=0,
                grid=grid,
                in_specs=[
                    pl.BlockSpec((tb, d_pad), lambda i: (i, 0)),     # x streams
                    pl.BlockSpec((d_pad, f_pad), lambda i: (0, 0)),  # W resident
                    pl.BlockSpec((1, f_pad), lambda i: (0, 0)),      # bias
                    pl.BlockSpec((f_pad, kp), lambda i: (0, 0)),     # pca^T
                ],
                out_specs=pl.BlockSpec((tb, kp), lambda i: (i, 0)),
            ),
            compiler_params=pltpu.CompilerParams(
                dimension_semantics=("parallel",),
                vmem_limit_bytes=VMEM_LIMIT_BYTES,
            ),
            cost_estimate=cost,
        )(x_p, w_p, b_f32, pca_weights_padded)
    else:
        # Streaming fallback: keep tb as large as possible (W re-stream factor
        # is exactly b_pad/tb); shrink td first (256-multiples for the MXU),
        # only then shrink tb.
        td = max(256, min(_round_up(td, 256), _round_up(d_in, 256)))
        while (_streaming_vmem_bytes(tb, td, f_pad, kp, out_itemsize)
               > VMEM_BUDGET_BYTES and td > 256):
            td -= 256
        while (_streaming_vmem_bytes(tb, td, f_pad, kp, out_itemsize)
               > VMEM_BUDGET_BYTES and tb > SUBLANE_BF16):
            tb = max(SUBLANE_BF16, _round_up(tb // 2, SUBLANE_BF16))
        b_pad = _round_up(batch, tb)
        d_pad = _round_up(d_in, td)
        x_p = jnp.pad(x, ((0, b_pad - batch),
                          (0, d_pad - d_in))).astype(jnp.bfloat16)
        w_p = jnp.pad(w, ((0, d_pad - d_in),
                          (0, f_pad - feat_dim))).astype(jnp.bfloat16)

        grid = (b_pad // tb, d_pad // td)
        cost = pl.CostEstimate(
            flops=2 * b_pad * d_pad * f_pad + 2 * b_pad * f_pad * kp,
            transcendentals=b_pad * f_pad,
            bytes_accessed=(x_p.size * 2 + grid[0] * w_p.size * 2  # W re-reads
                            + b_f32.size * 4 + pca_weights_padded.size * 4
                            + b_pad * kp * out_itemsize),
        )
        out = pl.pallas_call(
            _streaming_kernel,
            out_shape=jax.ShapeDtypeStruct((b_pad, kp), out_dtype),
            grid_spec=pltpu.PrefetchScalarGridSpec(
                num_scalar_prefetch=0,
                grid=grid,
                in_specs=[
                    pl.BlockSpec((tb, td), lambda i, k: (i, k)),       # x
                    pl.BlockSpec((td, f_pad), lambda i, k: (k, 0)),    # W
                    pl.BlockSpec((1, f_pad), lambda i, k: (0, 0)),     # bias
                    pl.BlockSpec((f_pad, kp), lambda i, k: (0, 0)),    # pca^T
                ],
                out_specs=pl.BlockSpec((tb, kp), lambda i, k: (i, 0)),
                scratch_shapes=[pltpu.VMEM((tb, f_pad), jnp.float32)],
            ),
            compiler_params=pltpu.CompilerParams(
                dimension_semantics=("parallel", "arbitrary"),
                vmem_limit_bytes=VMEM_LIMIT_BYTES,
            ),
            cost_estimate=cost,
        )(x_p, w_p, b_f32, pca_weights_padded)

    # Drop batch / lane padding; restore the module's f32 output dtype (the
    # kernel stores bf16 to halve HBM writeback of the 128-lane-padded output).
    return out[:batch, :num_k].astype(jnp.float32)


if __name__ == "__main__":
    key = jax.random.PRNGKey(0)
    k1, k2, k3, k4, k5 = jax.random.split(key, 5)

    B = 32                      # batch
    D_A, D_B = 128, 128         # feature dims of the two dict entries
    D_IN = D_A + D_B            # model input dim after pre_eval_func concat
    F = 128                     # model feature dim (early_return output)
    K = 8                       # number of PCA components

    x_dict = {
        "a": jax.random.normal(k1, (B, D_A), dtype=jnp.float32),
        "b": jax.random.normal(k2, (B, D_B), dtype=jnp.float32),
    }
    # deterministic synthetic "model" parameters
    w = jax.random.normal(k3, (D_IN, F), dtype=jnp.float32) * 0.1
    b = jax.random.normal(k4, (1, F), dtype=jnp.float32) * 0.1
    pca = jax.random.normal(k5, (K, F), dtype=jnp.float32)  # pca as in __init__

    # One-time "register_buffer" step (transpose + pad), off the hot path.
    pca_w_padded, num_k = prepare_pca_weights(pca)

    # Default tiles: resident-W path, grid=(2,) batch tiles (both v7x TCs busy).
    out = model_combiner_pca(x_dict, w, b, pca_w_padded, num_k)
    out = jax.block_until_ready(out)

    # Reference: same math with matching bf16 MXU input casts + f32 accumulate.
    x_cat = jnp.concatenate([x_dict["a"], x_dict["b"]], axis=-1)
    feat_ref = jnp.tanh(
        jnp.dot(x_cat.astype(jnp.bfloat16), w.astype(jnp.bfloat16),
                preferred_element_type=jnp.float32) + b
    )
    ref = jnp.dot(feat_ref, pca.T.astype(jnp.float32),
                  preferred_element_type=jnp.float32)

    assert out.shape == (B, K)
    assert jnp.allclose(out, ref, atol=5e-2, rtol=5e-2), float(
        jnp.max(jnp.abs(out - ref))
    )

    print("KERNEL_OK")
</pallas_src>

<mosaic_0001>
module attributes {stable_mosaic.version = 11 : i64} {
  func.func @_resident_kernel(%arg0: i32, %arg1: memref<16x256xbf16, #tpu.memory_space<vmem>>, %arg2: memref<256x128xbf16, #tpu.memory_space<vmem>>, %arg3: memref<1x128xf32, #tpu.memory_space<vmem>>, %arg4: memref<128x128xf32, #tpu.memory_space<vmem>>, %arg5: memref<16x128xbf16, #tpu.memory_space<vmem>>) attributes {dimension_semantics = [#tpu.dimension_semantics<parallel>], iteration_bounds = array<i64: 2>, scalar_prefetch = 0 : i64, scratch_operands = 0 : i64, tpu.core_type = #tpu.core_type<tc>, window_params = [{transform_indices = @transform_0, window_bounds = array<i64: 16, 256>}, {pipeline_mode = #tpu.pipeline_mode<synchronous>, transform_indices = @transform_1, window_bounds = array<i64: 256, 128>}, {pipeline_mode = #tpu.pipeline_mode<synchronous>, transform_indices = @transform_2, window_bounds = array<i64: 1, 128>}, {pipeline_mode = #tpu.pipeline_mode<synchronous>, transform_indices = @transform_3, window_bounds = array<i64: 128, 128>}, {transform_indices = @transform_4, window_bounds = array<i64: 16, 128>}]} {
    %c0 = arith.constant 0 : index
    %c0_0 = arith.constant 0 : index
    %0 = vector.load %arg1[%c0, %c0_0] : memref<16x256xbf16, #tpu.memory_space<vmem>>, vector<16x256xbf16>
    %c0_1 = arith.constant 0 : index
    %c0_2 = arith.constant 0 : index
    %1 = vector.load %arg2[%c0_1, %c0_2] : memref<256x128xbf16, #tpu.memory_space<vmem>>, vector<256x128xbf16>
    %cst = arith.constant dense<0.000000e+00> : vector<16x128xf32>
    %2 = tpu.matmul %0, %1, %cst {dimension_numbers = #tpu.dot_dimension_numbers<[1], [0], [0], [1], [0, 0, 1, 1], [], []>} : vector<16x256xbf16>, vector<256x128xbf16>, vector<16x128xf32> -> vector<16x128xf32>
    %c0_3 = arith.constant 0 : index
    %c0_4 = arith.constant 0 : index
    %3 = vector.load %arg3[%c0_3, %c0_4] : memref<1x128xf32, #tpu.memory_space<vmem>>, vector<1x128xf32>
    %4 = vector.broadcast %3 : vector<1x128xf32> to vector<16x128xf32>
    %5 = arith.addf %2, %4 : vector<16x128xf32>
    %6 = math.tanh %5 : vector<16x128xf32>
    %c0_5 = arith.constant 0 : index
    %c0_6 = arith.constant 0 : index
    %7 = vector.load %arg4[%c0_5, %c0_6] : memref<128x128xf32, #tpu.memory_space<vmem>>, vector<128x128xf32>
    %cst_7 = arith.constant dense<0.000000e+00> : vector<16x128xf32>
    %8 = tpu.matmul %6, %7, %cst_7 {dimension_numbers = #tpu.dot_dimension_numbers<[1], [0], [0], [1], [0, 0, 1, 1], [], []>} : vector<16x128xf32>, vector<128x128xf32>, vector<16x128xf32> -> vector<16x128xf32>
    %9 = arith.truncf %8 : vector<16x128xf32> to vector<16x128xbf16>
    %c0_8 = arith.constant 0 : index
    %c0_9 = arith.constant 0 : index
    %10 = vector.load %arg5[%c0_8, %c0_9] : memref<16x128xbf16, #tpu.memory_space<vmem>>, vector<16x128xbf16>
    tpu.vector_store %arg5[%c0_8, %c0_9], %9 {strides = array<i32>} : memref<16x128xbf16, #tpu.memory_space<vmem>>, vector<16x128xbf16>,
    return
  }
  func.func @transform_0(%arg0: i32) -> (i32, i32) {
    %c0_i32 = arith.constant 0 : i32
    %c0_i32_0 = arith.constant 0 : i32
    return %arg0, %c0_i32 : i32, i32
  }
  func.func @transform_1(%arg0: i32) -> (i32, i32) {
    %c0_i32 = arith.constant 0 : i32
    %c0_i32_0 = arith.constant 0 : i32
    %c0_i32_1 = arith.constant 0 : i32
    return %c0_i32, %c0_i32_0 : i32, i32
  }
  func.func @transform_2(%arg0: i32) -> (i32, i32) {
    %c0_i32 = arith.constant 0 : i32
    %c0_i32_0 = arith.constant 0 : i32
    %c0_i32_1 = arith.constant 0 : i32
    return %c0_i32, %c0_i32_0 : i32, i32
  }
  func.func @transform_3(%arg0: i32) -> (i32, i32) {
    %c0_i32 = arith.constant 0 : i32
    %c0_i32_0 = arith.constant 0 : i32
    %c0_i32_1 = arith.constant 0 : i32
    return %c0_i32, %c0_i32_0 : i32, i32
  }
  func.func @transform_4(%arg0: i32) -> (i32, i32) {
    %c0_i32 = arith.constant 0 : i32
    %c0_i32_0 = arith.constant 0 : i32
    return %arg0, %c0_i32 : i32, i32
  }
}

</mosaic_0001>

<bundles_post_ra>
// kernel: tpu_custom_call.1
= control target key start
LH: loop header
LB: loop body
LE: loop exit
PB: predicated region body
PF: predicated region fallthrough
CT: control target
= control target key end

     0   :  { %9 = vsyncpa [#allocation3], 0  ;;  %s1254_s0 = inlined_call_operand.hbm [shape: bf16[32,256], index: 0, kind: input, shape index: {}]   ;;  %s1255_s1 = inlined_call_operand.hbm [shape: bf16[256,128], index: 1, kind: input, shape index: {}]   ;;  %s1256_s2 = inlined_call_operand.vmem [shape: f32[1,128], index: 2, kind: input, shape index: {}]   ;;  %s1257_s3 = inlined_call_operand.hbm [shape: f32[128,128], index: 3, kind: input, shape index: {}]   ;;  %s1258_s4 = inlined_call_operand.hbm [shape: bf16[32,128], index: 4, kind: output, shape index: {}]  }
   0x1   :  { %11 = vsyncpa [#allocation3 + $0x1], 0 }
   0x2   :  { %12 = vsyncpa [#allocation6], 0 }
   0x3   :  { %13 = vsyncpa [#allocation4], 0 }
   0x4   :  { %15 = vsyncpa [#allocation4 + $0x1], 0  ;;  %s1052_s15 = smov 0   ;;  %s1054_s16 = smov 0  }
   0x5   :  { %s1056_s17 = smov 0   ;;  %s1058_s18 = smov 0  }
   0x6 LB: > { %s1073_s19 = sadd.s32 4294967295, %s1015_s18   ;;  %s646_s20 = sadd.s32 4294967294, %s1015_s18   ;;  %s1015_s18 = sphi %s1058_s18, %s1280_s18   ;;  %s1011_s17 = sphi %s1056_s17, %s1279_s17   ;;  %s1007_s16 = sphi %s1054_s16, %s1278_s16   ;;  %s1003_s15 = sphi %s1052_s15, %s1277_s15  }
   0x7   : > { %p41_p0 = scmp.ne.s32.totalorder %s1007_s16, %s1003_s15  ;;  %p1259_p1 = scmp.eq.s32.totalorder %s1073_s19, 0 }
   0x8   : > { %p134_p3 = scmp.eq.s32.totalorder %s646_s20, 1  ;;  %p647_p5 = scmp.ge.s32.totalorder %s1015_s18, 1 }
   0x9   : > { %p1082_p4 = por %p1259_p1, %p41_p0  ;;  %p141_p7 = scmp.lt.s32.totalorder %s1015_s18, 3 }
   0xa   : > { %p1087_p6 = por %p134_p3, %p41_p0  ;;  %s1017_s24 = smov [#allocation5]  }
   0xb   : > { %s1263_s21 = scalar_select %p1082_p4, 1, 0 }
   0xc   : > { %s1264_s22 = scalar_select %p1087_p6, 1, 0 }
   0xd   : > { %p1092_p8 = pnand %p647_p5, %p141_p7  ;;  %s153_s25 = sshll.u32 %s1017_s24, 4  ;;  %s154_s25 = int_to_ptr.vmem [resolvable:$true] %s153_s25 }
   0xe   : > { %s1018_s27 = smov [#allocation7]   ;;  %s878_s29 = scalar_lea.vmem %s154_s25, 2048 }
   0xf   : > { %s1265_s23 = scalar_select %p1092_p8, 1, 0 }
  0x10   : > { %p783_p9 = pneg %p1092_p8  ;;  %s169_s28 = sshll.u32 %s1018_s27, 4  ;;  %s170_s28 = int_to_ptr.vmem [resolvable:$true] %s169_s28 }
  0x11   : > { %p879_p13 = scmp.ne.s32.totalorder %s154_s25, %s878_s29  ;;  %p886_p5 = scmp.lt.s32.totalorder %s154_s25, %s154_s25 }
  0x12   : > { %p1101_p11 = pnand %p783_p9, %p1259_p1  ;;  %p887_p7 = scmp.lt.s32.totalorder %s878_s29, %s878_s29 }
  0x14   : > { %p869_p12 = pneg %p1101_p11  ;;  %p888_p10 = por %p887_p7, %p886_p5 }
  0x16   : > { %p881_p0 = pnand %p879_p13, %p869_p12 }
  0x18   : > { %p882_p3 = pneg %p881_p0 }
  0x1a   : > { %p889_p9 = pnand %p888_p10, %p882_p3 }
  0x1c   : > { %892 = shalt.err (!%p889_p9)
}
  0x1d   : > { %s1019_s30 = smov 64   ;;  %s1020_s5 = smov 4  }
  0x1e   : > { %786 = dma.hbm_to_vmem [thread:$0]  (!%p1101_p11), %s1255_s1, 2048, %s154_s25, [#allocation6], %s1019_s30, %s1019_s30, %s1020_s5  }
  0x1f   : > { %s904_s8 = scalar_lea.vmem %s170_s28, 2048  ;;  %p912_p2 = scmp.lt.s32.totalorder %s170_s28, %s170_s28 }
  0x20   : > { %p905_p1 = scmp.ne.s32.totalorder %s170_s28, %s904_s8  ;;  %p913_p6 = scmp.lt.s32.totalorder %s904_s8, %s904_s8 }
  0x22   : > { %p907_p13 = pnand %p905_p1, %p869_p12  ;;  %p914_p5 = por %p913_p6, %p912_p2 }
  0x24   : > { %p908_p0 = pneg %p907_p13 }
  0x26   : > { %p915_p10 = pnand %p914_p5, %p908_p0 }
  0x28   : > { %918 = shalt.err (!%p915_p10)
}
  0x29   : > { %s1021_s9 = smov 128   ;;  %s1022_s10 = smov 8  }
  0x2a   : > { %789 = dma.hbm_to_vmem [thread:$0]  (!%p1101_p11), %s1257_s3, 2048, %s170_s28, [#allocation6], %s1021_s9, %s1021_s9, %s1022_s10  }
  0x2b   : > { %s1127_s13 = sadd.s32 1, %s1015_s18   ;;  %s28_s20 = sadd.s32 1, %s1011_s17 }
  0x2c   : > { %s25_s14 = ssub.s32 %s1015_s18, %s1127_s13  ;;  %p35_p2 = scmp.ne.s32.totalorder %s1011_s17, %s1007_s16 }
  0x2d   : > { %p26_p1 = scmp.eq.s32.totalorder %s25_s14, 0  ;;  %p36_p6 = scmp.eq.s32.totalorder %s1015_s18, 0 }
  0x2e   : > { %p1267_p3 = scmp.eq.s32.totalorder %s1073_s19, 1  ;;  %p800_p9 = scmp.lt.s32.totalorder %s1015_s18, 2 }
  0x2f   : > { %s1136_s24 = scalar_select %p26_p1, %s1011_s17, %s28_s20  }
  0x30   : > { %p37_p12 = por %p36_p6, %p35_p2  ;;  %p1140_p7 = por %p1267_p3, %p35_p2 }
  0x31   : > { %s183_s26 = sand.u32 1, %s1011_s17   ;;  %s687_s28 = sshll.u32 %s1015_s18, 8 }
  0x32   : > { %s1268_s25 = scalar_select %p1140_p7, 1, 0 }
  0x33   : > { %s651_s27 = sshll.u32 %s183_s26, 4  ;;  %s1150_s5 = scalar_lea.hbm %s1254_s0, %s687_s28 }
  0x34   : > { %s187_s6 = scalar_lea.vmem [#allocation2], %s651_s27  ;;  %p1154_p11 = pnand %p800_p9, %p37_p12 }
  0x35   : > { %s195_s7 = sshll.u32 %s187_s6, 4  ;;  %s1158_s11 = scalar_lea.sflag [#allocation3], %s183_s26  ;;  %s1152_s7 = int_to_ptr.vmem [resolvable:$true] %s195_s7 }
  0x36   : > { %s919_s12 = scalar_lea.hbm %s1150_s5, 256  ;;  %p921_p0 = pneg %p1154_p11 }
  0x37   : > { %p920_p13 = scmp.ne.s32.totalorder %s1150_s5, %s919_s12  ;;  %s924_s27 = scalar_lea.hbm %s1254_s0, 512 }
  0x38   : > { %p925_p1 = scmp.lt.s32.totalorder %s1150_s5, %s1254_s0  ;;  %p926_p2 = scmp.lt.s32.totalorder %s924_s27, %s919_s12 }
  0x39   : > { %p922_p5 = pnand %p921_p0, %p920_p13 }
  0x3a   : > { %p927_p6 = por %p926_p2, %p925_p1 }
  0x3b   : > { %p923_p10 = pneg %p922_p5 }
  0x3d   : > { %p928_p12 = pnand %p927_p6, %p923_p10 }
  0x3f   : > { %931 = shalt.err (!%p928_p12)
}
  0x40   : > { %s932_s26 = scalar_lea.vmem %s1152_s7, 256  ;;  %s1023_s30 = smov [#allocation2]  }
  0x41   : > { %p933_p3 = scmp.ne.s32.totalorder %s1152_s7, %s932_s26  ;;  %s937_s6 = sshll.u32 %s1023_s30, 4  ;;  %s938_s6 = int_to_ptr.vmem [resolvable:$false] %s937_s6 }
  0x42   : > { %s939_s14 = scalar_lea.vmem %s938_s6, 512  ;;  %p940_p5 = scmp.lt.s32.totalorder %s1152_s7, %s938_s6 }
  0x43   : > { %p935_p9 = pnand %p933_p3, %p921_p0  ;;  %p941_p7 = scmp.lt.s32.totalorder %s939_s14, %s932_s26 }
  0x45   : > { %p936_p13 = pneg %p935_p9  ;;  %p942_p4 = por %p941_p7, %p940_p5 }
  0x47   : > { %p943_p8 = pnand %p942_p4, %p936_p13 }
  0x49   : > { %946 = shalt.err (!%p943_p8)
}
  0x4a   : > { %793 = dma.hbm_to_vmem [thread:$0]  (!%p1154_p11), %s1150_s5, 256, %s1152_s7, %s1158_s11, %s1021_s9, %s1021_s9, %s1022_s10  }
  0x4b   : > { %p1270_p0 = scmp.ne.s32.totalorder %s1265_s23, 0 }
  0x4c   : > { %s1185_s12 = sand.u32 (!%p1270_p0), 1, %s1007_s16   ;;  %p1271_p4 = scmp.ne.s32.totalorder (!%p1270_p0), %s1263_s21, 0 }
  0x4d   : > { %207 = sbr.rel (%p1270_p0) target bundleno = 547 (0x223), region = 36  ;;  %s656_s20 = sshll.u32 (!%p1270_p0), %s1185_s12, 4 }
  0x4e   : > { %s210_s27 = scalar_lea.sflag (!%p1270_p0), [#allocation3], %s1185_s12  ;;  %s1189_s28 = scalar_lea.vmem (!%p1270_p0), [#allocation2], %s656_s20 }
  0x52   : > { %990 = dma.done.wait (%p1271_p4), %s210_s27, 256  }
  0x53   : > { %992 = vsyncadd (%p1271_p4), %s210_s27, 4294967040  ;;  %p1272_p8 = scmp.eq.s32.totalorder %s1073_s19, 0 }
  0x55   : > { %994 = dma.done.wait (%p1272_p8), [#allocation6], 4096   ;;  %p1273_p7 = pmov %p1272_p8 }
  0x56   : > { %v844_v0 = vld [vmem:[#allocation5 + $0x78] sm:$0xff]   ;;  %v846_v2 = vld [vmem:[#allocation5 + $0x70] sm:$0xff]   ;;  %v848_v4 = vld [vmem:[#allocation5 + $0x68] sm:$0xff]   ;;  %s659_s9 = sshll.u32 %s1185_s12, 3  ;;  %s690_s7 = sshll.u32 %s1073_s19, 7 }
  0x57   : > { %996 = vsyncadd (%p1273_p7), [#allocation6], 4294963200  ;;  %v845_v1 = vld [vmem:[#allocation5 + $0x38] sm:$0xff]   ;;  %696 = vmatprep.subr.bf16.mxu0 %v844_v0  ;;  %v847_v3 = vld [vmem:[#allocation5 + $0x30] sm:$0xff]   ;;  %s245_s10 = scalar_lea.vmem [#allocation8], %s659_s9  ;;  %s1211_s29 = scalar_lea.hbm %s1258_s4, %s690_s7 }
  0x58   : > { %697 = vmatpush3.bf16.msra.mxu0 %v845_v1  ;;  %v849_v5 = vld [vmem:[#allocation5 + $0x28] sm:$0xff]   ;;  %v850_v6 = vld [vmem:[#allocation5 + $0x60] sm:$0xff]   ;;  %v852_v8 = vld [vmem:[#allocation5 + $0x58] sm:$0xff]   ;;  %s554_s5 = sshll.u32 %s245_s10, 4  ;;  %s541_s26 = scalar_lea.sflag [#allocation4], %s1185_s12  ;;  %s1206_s5 = int_to_ptr.vmem [resolvable:$true] %s554_s5 }
  0x59   : > { %698 = vmatprep.subr.bf16.mxu0 %v846_v2  ;;  %v851_v7 = vld [vmem:[#allocation5 + $0x20] sm:$0xff]   ;;  %v853_v9 = vld [vmem:[#allocation5 + $0x18] sm:$0xff]   ;;  %v854_v10 = vld [vmem:[#allocation5 + $0x50] sm:$0xff]   ;;  %s947_s30 = scalar_lea.vmem %s1206_s5, 128  ;;  %p1274_p10 = scmp.ne.s32.totalorder %s1268_s25, 0 }
  0x5a   : > { %v862_v11 = vld [vmem:[%s1189_s28 + $0x4] ss:$8 sps:$4 sm:$0xff]   ;;  %v860_v21 = vld [vmem:[%s1189_s28] ss:$8 sps:$4 sm:$0xff]   ;;  %p948_p11 = scmp.ne.s32.totalorder %s1206_s5, %s947_s30  ;;  %s1024_s19 = smov [#allocation8]  }
  0x5b   : > { %v454_v12 = vld [vmem:[#allocation7 + $0x78] sm:$0xff]  ;;  %v453_v13 = vld [vmem:[#allocation7 + $0x70] sm:$0xff]  ;;  %428 = vmatprep.mubr.bf16.mxu0 %v862_v11  ;;  %v856_v15 = vld [vmem:[#allocation5 + $0x48] sm:$0xff]   ;;  %s951_s6 = sshll.u32 %s1024_s19, 4  ;;  %s952_s6 = int_to_ptr.vmem [resolvable:$false] %s951_s6 }
  0x5c   : > { %699 = vmatpush3.bf16.msra.mxu0 %v847_v3  ;;  %736 = vmatprep.subr.mxu1 %v454_v12  ;;  %v855_v14 = vld [vmem:[#allocation5 + $0x10] sm:$0xff]   ;;  %v452_v16 = vld [vmem:[#allocation7 + $0x68] sm:$0xff]  ;;  %v451_v17 = vld [vmem:[#allocation7 + $0x60] sm:$0xff]  ;;  %p949_p1 = pnand %p948_p11, %p1274_p10  ;;  %s953_s14 = scalar_lea.vmem %s952_s6, 256 }
  0x5d   : > { %700 = vmatprep.subr.bf16.mxu0 %v848_v4  ;;  %737 = vmatpush3.msra.mxu1 %v454_v12  ;;  %v857_v18 = vld [vmem:[#allocation5 + $0x8] sm:$0xff]   ;;  %v858_v19 = vld [vmem:[#allocation5 + $0x40] sm:$0xff]   ;;  %v450_v22 = vld [vmem:[#allocation7 + $0x58] sm:$0xff]  ;;  %p954_p6 = scmp.lt.s32.totalorder %s1206_s5, %s952_s6  ;;  %p955_p12 = scmp.lt.s32.totalorder %s953_s14, %s947_s30 }
  0x5e   : > { %738 = vmatprep.subr.mxu1 %v453_v13  ;;  %v859_v20 = vld [vmem:[#allocation5] sm:$0xff]   ;;  %v449_v23 = vld [vmem:[#allocation7 + $0x50] sm:$0xff]  ;;  %v448_v24 = vld [vmem:[#allocation7 + $0x48] sm:$0xff]  ;;  %p950_p2 = pneg %p949_p1 }
  0x5f   : > { %739 = vmatpush3.msra.mxu1 %v453_v13  ;;  %v447_v25 = vld [vmem:[#allocation7 + $0x40] sm:$0xff]  ;;  %v446_v26 = vld [vmem:[#allocation7 + $0x38] sm:$0xff]  ;;  %v445_v27 = vld [vmem:[#allocation7 + $0x30] sm:$0xff]  ;;  %p956_p3 = por %p955_p12, %p954_p6 }
  0x60   : > { %701 = vmatpush3.bf16.msra.mxu0 %v849_v5  ;;  %740 = vmatprep.subr.mxu1 %v452_v16  ;;  %v444_v28 = vld [vmem:[#allocation7 + $0x28] sm:$0xff]  ;;  %v443_v29 = vld [vmem:[#allocation7 + $0x20] sm:$0xff]  ;;  %v442_v30 = vld [vmem:[#allocation7 + $0x18] sm:$0xff] }
  0x61   : > { %702 = vmatprep.subr.bf16.mxu0 %v850_v6  ;;  %741 = vmatpush3.msra.mxu1 %v452_v16  ;;  %v441_v31 = vld [vmem:[#allocation7 + $0x10] sm:$0xff]  ;;  %v440_v32 = vld [vmem:[#allocation7 + $0x8] sm:$0xff]  ;;  %v439_v33 = vld [vmem:[#allocation7] sm:$0xff]  ;;  %p957_p9 = pnand %p956_p3, %p950_p2 }
  0x62   : > { %742 = vmatprep.subr.mxu1 %v451_v17  ;;  %v660_v35 = vld [vmem:[%s1256_s2] ss:$0 sm:$0xff] }
  0x63   : > { %743 = vmatpush3.msra.mxu1 %v451_v17 }
  0x64   : > { %703 = vmatpush3.bf16.msra.mxu0 %v851_v7  ;;  %744 = vmatprep.subr.mxu1 %v450_v22 }
  0x65   : > { %704 = vmatprep.subr.bf16.mxu0 %v852_v8  ;;  %745 = vmatpush3.msra.mxu1 %v450_v22 }
  0x66   : > { %746 = vmatprep.subr.mxu1 %v449_v23 }
  0x67   : > { %747 = vmatpush3.msra.mxu1 %v449_v23 }
  0x68   : > { %705 = vmatpush3.bf16.msra.mxu0 %v853_v9  ;;  %748 = vmatprep.subr.mxu1 %v448_v24 }
  0x69   : > { %706 = vmatprep.subr.bf16.mxu0 %v854_v10  ;;  %749 = vmatpush3.msra.mxu1 %v448_v24 }
  0x6a   : > { %750 = vmatprep.subr.mxu1 %v447_v25 }
  0x6b   : > { %751 = vmatpush3.msra.mxu1 %v447_v25 }
  0x6c   : > { %707 = vmatpush3.bf16.msra.mxu0 %v855_v14  ;;  %752 = vmatprep.subr.mxu1 %v446_v26 }
  0x6d   : > { %708 = vmatprep.subr.bf16.mxu0 %v856_v15  ;;  %753 = vmatpush3.msra.mxu1 %v446_v26 }
  0x6e   : > { %754 = vmatprep.subr.mxu1 %v445_v27 }
  0x6f   : > { %755 = vmatpush3.msra.mxu1 %v445_v27 }
  0x70   : > { %709 = vmatpush3.bf16.msra.mxu0 %v857_v18  ;;  %756 = vmatprep.subr.mxu1 %v444_v28 }
  0x71   : > { %710 = vmatprep.subr.bf16.mxu0 %v858_v19  ;;  %757 = vmatpush3.msra.mxu1 %v444_v28 }
  0x72   : > { %758 = vmatprep.subr.mxu1 %v443_v29 }
  0x73   : > { %759 = vmatpush3.msra.mxu1 %v443_v29 }
  0x74   : > { %711 = vmatpush3.bf16.msra.mxu0 %v859_v20  ;;  %760 = vmatprep.subr.mxu1 %v442_v30 }
  0x75   : > { %761 = vmatpush3.msra.mxu1 %v442_v30 }
  0x76   : > { %762 = vmatprep.subr.mxu1 %v441_v31 }
  0x77   : > { %429 = vmatmul.mubr.bf16.vlgmr.msra.gmra.mxu0 %v860_v21  ;;  %763 = vmatpush3.msra.mxu1 %v441_v31 }
  0x78   : > { %764 = vmatprep.subr.mxu1 %v440_v32 }
  0x79   : > { %765 = vmatpush3.msra.mxu1 %v440_v32 }
  0x7a   : > { %766 = vmatprep.subr.mxu1 %v439_v33 }
  0x7b   : > { %767 = vmatpush3.msra.mxu1 %v439_v33 }
 0x137   : > { %v712_v34 = vpop.f32.mrf.mxu0 }
 0x139   : > { %v713_v36 = vpop.f32.mrf.mxu0 }
 0x13a   : > { %v714_v37 = vadd.f32 %v713_v36, %v712_v34 }
 0x13b   : > { %v715_v38 = vpop.f32.mrf.mxu0 }
 0x13c   : > { %v431_v39 = vadd.f32 %v714_v37, %v660_v35 }
 0x13d   : > { %v716_v40 = vpop.f32.mrf.mxu0 }
 0x13e   : > { %v717_v41 = vadd.f32 %v716_v40, %v715_v38  ;;  %863 = vtanh.f32 %v431_v39 }
 0x140   : > { %v434_v42 = vadd.f32 %v717_v41, %v660_v35 }
 0x142   : > { %865 = vtanh.f32 %v434_v42 }
 0x14b   : > { %v864_v43 = vpop.eup %863 }
 0x14c   : > { %768 = vmatprep.mubr.f32.mxu1 %v864_v43 }
 0x14f   : > { %v866_v44 = vpop.eup %865 }
 0x150   : > { %769 = vmatmul.mubr.f32.vlgmr.msra.gmra.mxu1 %v866_v44 }
 0x210   : > { %v770_v45 = vpop.f32.mrf.mxu1 }
 0x212   : > { %v521_v46 = vpop.f32.mrf.mxu1 }
 0x213   : > { %v694_v47 = vpack.c.bf16 %v770_v45, %v521_v46 }
 0x215   : > { %695 = vst [vmem:[%s245_s10] sm:$0xff] %v694_v47  }
 0x216   : > { %960 = shalt.err (!%p957_p9)
}
 0x217   : > { %s961_s20 = scalar_lea.hbm %s1211_s29, 128  ;;  %s965_s21 = scalar_lea.hbm %s1258_s4, 256 }
 0x218   : > { %p962_p13 = scmp.ne.s32.totalorder %s1211_s29, %s961_s20  ;;  %p966_p4 = scmp.lt.s32.totalorder %s1211_s29, %s1258_s4 }
 0x219   : > { %p967_p8 = scmp.lt.s32.totalorder %s965_s21, %s961_s20 }
 0x21a   : > { %p963_p5 = pnand %p962_p13, %p1274_p10 }
 0x21b   : > { %p968_p7 = por %p967_p8, %p966_p4 }
 0x21c   : > { %p964_p0 = pneg %p963_p5 }
 0x21e   : > { %p969_p11 = pnand %p968_p7, %p964_p0 }
 0x220   : > { %972 = shalt.err (!%p969_p11)
}
 0x221   : > { %s1025_s10 = smov 64   ;;  %s1026_s7 = smov 4  }
 0x222   : > { %781 = dma.vmem_to_hbm [thread:$0]  (%p1274_p10), %s1206_s5, 128, %s1211_s29, %s541_s26, %s1025_s10, %s1025_s10, %s1026_s7  }
 0x223 PF: > { %s569_s8 = sand.u32 1, %s1003_s15   ;;  %p1275_p1 = scmp.ne.s32.totalorder %s1264_s22, 0 }
 0x224   : > { %p1276_p2 = scmp.ge.s32.totalorder %s1015_s18, 2  ;;  %s570_s11 = scalar_lea.sflag [#allocation4], %s569_s8 }
 0x226   : > { %p795_p6 = pnand %p1276_p2, %p1275_p1 }
 0x228   : > { %p796_p12 = pneg %p795_p6 }
 0x22a   : > { %998 = dma.done.wait (%p796_p12), %s570_s11, 128  }
 0x22b   : > { %1000 = vsyncadd (%p796_p12), %s570_s11, 4294967168  ;;  %p18_p3 = scmp.ge.s32.totalorder %s1127_s13, 4   ;;  %s1277_s15 = smov %s1007_s16 }
 0x22c   : > { %s1278_s16 = smov %s1011_s17  ;;  %s1279_s17 = smov %s1136_s24 }
 0x22d   : > { %s1280_s18 = smov %s1127_s13  ;;  %20 = sbr.rel (!%p18_p3) target bundleno = 6 (0x6), region = 89 }
 0x232   :  { %575 = vsyncpa [#allocation3], 1 }
 0x233   :  { %577 = vsyncpa [#allocation3 + $0x1], 1 }
 0x234   :  { %578 = vsyncpa [#allocation6], 1 }
 0x235   :  { %579 = vsyncpa [#allocation4], 1 }
 0x236   :  { %581 = vsyncpa [#allocation4 + $0x1], 1 }

</bundles_post_ra>
